<compile_context>
chip_gen: v5e
topology: v5e:2x2
jax: 0.10.0
libtpu: 0.0.40
codegen_flags: <defaults>
</compile_context>

<pallas_src>
import functools

import jax
import jax.numpy as jnp
from jax.experimental import pallas as pl
from jax.experimental.pallas import tpu as pltpu

LATENT_DIM = 1
HIDDEN = 64
OUT_DIM = 1

# Sublane row offsets inside the packed weight slab (all 8-sublane aligned).
ROW_WE1 = 0            # encoder.fc weight        (64, 1)
ROW_BE1 = 64           # encoder.fc bias          (64, 1)
ROW_WM = 128           # encoder.fc_mean weight   (64, 1)
ROW_WV = 192           # encoder.fc_log_var weight(64, 1)
ROW_WD1 = 256          # decoder.fc weight        (64, 1)
ROW_BD1 = 320          # decoder.fc bias          (64, 1)
ROW_WD2 = 384          # decoder.fc_out weight    (64, 1)
ROW_BM = 448           # encoder.fc_mean bias     (1, 1)
ROW_BV = 456           # encoder.fc_log_var bias  (1, 1)
ROW_BD2 = 464          # decoder.fc_out bias      (1, 1)
W_ROWS = 472


def _round_up(n, m):
    return ((n + m - 1) // m) * m


def vae_kernel(io_ref, w_ref, out_ref):
    # io_ref: (2, TILE_B)  row 0 = x, row 1 = eps   (batch on lanes)
    # w_ref:  (W_ROWS, 1)  packed weights/biases    (hidden units on sublanes)
    # out_ref:(3, TILE_B)  rows = recon, mean, logvar
    x = io_ref[0:1, :]                                    # (1, T)
    eps = io_ref[1:2, :]                                  # (1, T)

    we1 = w_ref[ROW_WE1:ROW_WE1 + HIDDEN, :]              # (64, 1)
    be1 = w_ref[ROW_BE1:ROW_BE1 + HIDDEN, :]              # (64, 1)
    wm = w_ref[ROW_WM:ROW_WM + HIDDEN, :]                 # (64, 1)
    wv = w_ref[ROW_WV:ROW_WV + HIDDEN, :]                 # (64, 1)
    wd1 = w_ref[ROW_WD1:ROW_WD1 + HIDDEN, :]              # (64, 1)
    bd1 = w_ref[ROW_BD1:ROW_BD1 + HIDDEN, :]              # (64, 1)
    wd2 = w_ref[ROW_WD2:ROW_WD2 + HIDDEN, :]              # (64, 1)
    bm = w_ref[ROW_BM:ROW_BM + 1, :]                      # (1, 1)
    bv = w_ref[ROW_BV:ROW_BV + 1, :]                      # (1, 1)
    bd2 = w_ref[ROW_BD2:ROW_BD2 + 1, :]                   # (1, 1)

    # Encoder fc: Linear(1, 64) + ReLU as a VPU broadcast outer product.
    h = jnp.maximum(we1 * x + be1, 0.0)                   # (64, T)

    # fc_mean / fc_log_var: Linear(64, 1) as elementwise mul + XLU sublane reduce.
    mean = jnp.sum(h * wm, axis=0, keepdims=True) + bm    # (1, T)
    logvar = jnp.sum(h * wv, axis=0, keepdims=True) + bv  # (1, T)

    # Reparameterize: z = mean + eps * exp(0.5 * log_var)  (exp -> EUP slot).
    z = mean + eps * jnp.exp(0.5 * logvar)                # (1, T)

    # Decoder: Linear(1, 64) + ReLU, then Linear(64, 1).
    h2 = jnp.maximum(wd1 * z + bd1, 0.0)                  # (64, T)
    recon = jnp.sum(h2 * wd2, axis=0, keepdims=True) + bd2  # (1, T)

    out_ref[0:1, :] = recon
    out_ref[1:2, :] = mean
    out_ref[2:3, :] = logvar


def _choose_tile(batch, tile_b):
    lane_b = _round_up(max(batch, 1), 128)
    # Lane-dense multiple of 128; cap at 8192 so (64, tile) f32 intermediates
    # (~2 MiB each) stay well inside v5e's 16 MiB / v7x's 32 MiB scoped VMEM.
    tile_b = max(128, min(_round_up(tile_b, 128), 8192))
    if tile_b >= lane_b:
        # A single tile would cover the whole batch: split into >= 2 grid steps
        # when possible so "parallel" can shard across v7x's two TensorCores.
        tile_b = max(128, _round_up(lane_b // 2, 128)) if lane_b > 128 else 128
    b_pad = _round_up(batch, tile_b)
    return tile_b, b_pad


def _pack_params(params):
    we1, be1, wm, bm, wv, bv, wd1, bd1, wd2, bd2 = params
    w = jnp.zeros((W_ROWS, 1), jnp.float32)
    w = w.at[ROW_WE1:ROW_WE1 + HIDDEN].set(we1.astype(jnp.float32))
    w = w.at[ROW_BE1:ROW_BE1 + HIDDEN].set(be1.astype(jnp.float32))
    w = w.at[ROW_WM:ROW_WM + HIDDEN].set(wm.astype(jnp.float32))
    w = w.at[ROW_WV:ROW_WV + HIDDEN].set(wv.astype(jnp.float32))
    w = w.at[ROW_WD1:ROW_WD1 + HIDDEN].set(wd1.astype(jnp.float32))
    w = w.at[ROW_BD1:ROW_BD1 + HIDDEN].set(bd1.astype(jnp.float32))
    w = w.at[ROW_WD2:ROW_WD2 + HIDDEN].set(wd2.astype(jnp.float32))
    w = w.at[ROW_BM:ROW_BM + 1].set(bm.astype(jnp.float32))
    w = w.at[ROW_BV:ROW_BV + 1].set(bv.astype(jnp.float32))
    w = w.at[ROW_BD2:ROW_BD2 + 1].set(bd2.astype(jnp.float32))
    return w


@functools.partial(jax.jit, static_argnames=("tile_b",))
def vae_forward(x, eps, params, *, tile_b=8192):
    """x, eps: (B, 1) f32. Returns (reconstructed_x, latent_mean, latent_log_var), each (B, 1)."""
    B = x.shape[0]
    tile_b, b_pad = _choose_tile(B, tile_b)
    grid = (b_pad // tile_b,)

    # Pack x and eps into one lane-dense (2, b_pad) slab (1 input DMA / step).
    io = jnp.concatenate(
        [x.astype(jnp.float32).reshape(1, B), eps.astype(jnp.float32).reshape(1, B)],
        axis=0)
    io = jnp.pad(io, ((0, 0), (0, b_pad - B)))

    w_packed = _pack_params(params)

    io_spec = pl.BlockSpec((2, tile_b), lambda i: (0, i))
    w_spec = pl.BlockSpec((W_ROWS, 1), lambda i: (0, 0))      # resident weights
    out_spec = pl.BlockSpec((3, tile_b), lambda i: (0, i))

    out = pl.pallas_call(
        vae_kernel,
        out_shape=jax.ShapeDtypeStruct((3, b_pad), jnp.float32),
        grid=grid,
        in_specs=[io_spec, w_spec],
        out_specs=out_spec,
        compiler_params=pltpu.CompilerParams(dimension_semantics=("parallel",)),
    )(io, w_packed)

    recon = out[0, :B].reshape(B, 1).astype(x.dtype)
    mean = out[1, :B].reshape(B, 1).astype(x.dtype)
    logvar = out[2, :B].reshape(B, 1).astype(x.dtype)
    return recon, mean, logvar


def init_params(key):
    # nn.Linear-style init: U(-1/sqrt(fan_in), 1/sqrt(fan_in)).
    # Every Linear(1,64) weight/bias is a (HIDDEN, 1) column; every Linear(64,1)
    # weight is a (HIDDEN, 1) column (PyTorch weight transposed) with a (1, 1)
    # scalar bias.
    ks = jax.random.split(key, 10)

    def lin(kw, kb, fan_in, w_shape, b_shape):
        bound = 1.0 / jnp.sqrt(float(fan_in))
        w = jax.random.uniform(kw, w_shape, jnp.float32, -bound, bound)
        b = jax.random.uniform(kb, b_shape, jnp.float32, -bound, bound)
        return w, b

    we1, be1 = lin(ks[0], ks[1], LATENT_DIM, (HIDDEN, 1), (HIDDEN, 1))   # encoder.fc
    wm, bm = lin(ks[2], ks[3], HIDDEN, (HIDDEN, 1), (1, 1))              # encoder.fc_mean
    wv, bv = lin(ks[4], ks[5], HIDDEN, (HIDDEN, 1), (1, 1))              # encoder.fc_log_var
    wd1, bd1 = lin(ks[6], ks[7], LATENT_DIM, (HIDDEN, 1), (HIDDEN, 1))   # decoder.fc
    wd2, bd2 = lin(ks[8], ks[9], HIDDEN, (HIDDEN, 1), (1, 1))            # decoder.fc_out
    return (we1, be1, wm, bm, wv, bv, wd1, bd1, wd2, bd2)


def vae_reference(x, eps, params):
    # Plain-JAX reference in the standard (B, features) layout.
    we1, be1, wm, bm, wv, bv, wd1, bd1, wd2, bd2 = params
    h = jnp.maximum(x * we1.reshape(1, -1) + be1.reshape(1, -1), 0.0)    # (B, 64)
    mean = h @ wm + bm                                                   # (B, 1)
    logvar = h @ wv + bv                                                 # (B, 1)
    z = mean + eps * jnp.exp(0.5 * logvar)                               # (B, 1)
    h2 = jnp.maximum(z * wd1.reshape(1, -1) + bd1.reshape(1, -1), 0.0)   # (B, 64)
    recon = h2 @ wd2 + bd2                                               # (B, 1)
    return recon, mean, logvar


if __name__ == "__main__":
    key = jax.random.PRNGKey(0)
    pkey, xkey, ekey, xkey2, ekey2 = jax.random.split(key, 5)
    params = init_params(pkey)

    # Small batch (single grid step).
    batch = 8
    x = jax.random.normal(xkey, (batch, LATENT_DIM), jnp.float32)
    # Gaussian noise for reparameterize (torch.randn_like equivalent), passed in
    # so the kernel stays deterministic and checkable against the reference.
    eps = jax.random.normal(ekey, (batch, LATENT_DIM), jnp.float32)

    recon, mean, logvar = vae_forward(x, eps, params)
    recon, mean, logvar = jax.block_until_ready((recon, mean, logvar))
    recon_r, mean_r, logvar_r = vae_reference(x, eps, params)

    assert recon.shape == (batch, OUT_DIM)
    assert mean.shape == (batch, LATENT_DIM)
    assert logvar.shape == (batch, LATENT_DIM)
    assert jnp.allclose(recon, recon_r, atol=1e-5, rtol=1e-5)
    assert jnp.allclose(mean, mean_r, atol=1e-5, rtol=1e-5)
    assert jnp.allclose(logvar, logvar_r, atol=1e-5, rtol=1e-5)

    # Awkward batch (exercises grid > 1, lane padding, and the 2-step split).
    batch2 = 300
    x2 = jax.random.normal(xkey2, (batch2, LATENT_DIM), jnp.float32)
    eps2 = jax.random.normal(ekey2, (batch2, LATENT_DIM), jnp.float32)
    recon2, mean2, logvar2 = jax.block_until_ready(vae_forward(x2, eps2, params))
    recon2_r, mean2_r, logvar2_r = vae_reference(x2, eps2, params)
    assert jnp.allclose(recon2, recon2_r, atol=1e-5, rtol=1e-5)
    assert jnp.allclose(mean2, mean2_r, atol=1e-5, rtol=1e-5)
    assert jnp.allclose(logvar2, logvar2_r, atol=1e-5, rtol=1e-5)

    print("KERNEL_OK")
</pallas_src>

<mosaic_0001>
module attributes {stable_mosaic.version = 11 : i64} {
  func.func @vae_kernel(%arg0: i32, %arg1: memref<2x128xf32, #tpu.memory_space<vmem>>, %arg2: memref<472x1xf32, #tpu.memory_space<vmem>>, %arg3: memref<3x128xf32, #tpu.memory_space<vmem>>) attributes {dimension_semantics = [#tpu.dimension_semantics<parallel>], iteration_bounds = array<i64: 1>, scalar_prefetch = 0 : i64, scratch_operands = 0 : i64, tpu.core_type = #tpu.core_type<tc>, window_params = [{transform_indices = @transform_0, window_bounds = array<i64: 2, 128>}, {pipeline_mode = #tpu.pipeline_mode<synchronous>, transform_indices = @transform_1, window_bounds = array<i64: 472, 1>}, {transform_indices = @transform_2, window_bounds = array<i64: 3, 128>}]} {
    %c0 = arith.constant 0 : index
    %c0_0 = arith.constant 0 : index
    %0 = vector.load %arg1[%c0, %c0_0] : memref<2x128xf32, #tpu.memory_space<vmem>>, vector<1x128xf32>
    %c1 = arith.constant 1 : index
    %c0_1 = arith.constant 0 : index
    %1 = vector.load %arg1[%c1, %c0_1] : memref<2x128xf32, #tpu.memory_space<vmem>>, vector<1x128xf32>
    %c0_2 = arith.constant 0 : index
    %c0_3 = arith.constant 0 : index
    %2 = vector.load %arg2[%c0_2, %c0_3] : memref<472x1xf32, #tpu.memory_space<vmem>>, vector<64x1xf32>
    %c64 = arith.constant 64 : index
    %c0_4 = arith.constant 0 : index
    %3 = vector.load %arg2[%c64, %c0_4] : memref<472x1xf32, #tpu.memory_space<vmem>>, vector<64x1xf32>
    %c128 = arith.constant 128 : index
    %c0_5 = arith.constant 0 : index
    %4 = vector.load %arg2[%c128, %c0_5] : memref<472x1xf32, #tpu.memory_space<vmem>>, vector<64x1xf32>
    %c192 = arith.constant 192 : index
    %c0_6 = arith.constant 0 : index
    %5 = vector.load %arg2[%c192, %c0_6] : memref<472x1xf32, #tpu.memory_space<vmem>>, vector<64x1xf32>
    %c256 = arith.constant 256 : index
    %c0_7 = arith.constant 0 : index
    %6 = vector.load %arg2[%c256, %c0_7] : memref<472x1xf32, #tpu.memory_space<vmem>>, vector<64x1xf32>
    %c320 = arith.constant 320 : index
    %c0_8 = arith.constant 0 : index
    %7 = vector.load %arg2[%c320, %c0_8] : memref<472x1xf32, #tpu.memory_space<vmem>>, vector<64x1xf32>
    %c384 = arith.constant 384 : index
    %c0_9 = arith.constant 0 : index
    %8 = vector.load %arg2[%c384, %c0_9] : memref<472x1xf32, #tpu.memory_space<vmem>>, vector<64x1xf32>
    %c448 = arith.constant 448 : index
    %c0_10 = arith.constant 0 : index
    %9 = vector.load %arg2[%c448, %c0_10] : memref<472x1xf32, #tpu.memory_space<vmem>>, vector<1x1xf32>
    %c456 = arith.constant 456 : index
    %c0_11 = arith.constant 0 : index
    %10 = vector.load %arg2[%c456, %c0_11] : memref<472x1xf32, #tpu.memory_space<vmem>>, vector<1x1xf32>
    %c464 = arith.constant 464 : index
    %c0_12 = arith.constant 0 : index
    %11 = vector.load %arg2[%c464, %c0_12] : memref<472x1xf32, #tpu.memory_space<vmem>>, vector<1x1xf32>
    %12 = vector.broadcast %2 : vector<64x1xf32> to vector<64x128xf32>
    %13 = vector.broadcast %0 : vector<1x128xf32> to vector<64x128xf32>
    %14 = arith.mulf %12, %13 : vector<64x128xf32>
    %15 = vector.broadcast %3 : vector<64x1xf32> to vector<64x128xf32>
    %16 = arith.addf %14, %15 : vector<64x128xf32>
    %cst = arith.constant 0.000000e+00 : f32
    %17 = vector.broadcast %cst : f32 to vector<64x128xf32>
    %18 = arith.maximumf %16, %17 : vector<64x128xf32>
    %19 = vector.broadcast %4 : vector<64x1xf32> to vector<64x128xf32>
    %20 = arith.mulf %18, %19 : vector<64x128xf32>
    %cst_13 = arith.constant dense<0.000000e+00> : vector<128xf32>
    %21 = vector.multi_reduction <add>, %20, %cst_13 [0] : vector<64x128xf32> to vector<128xf32>
    %22 = vector.shape_cast %21 : vector<128xf32> to vector<1x128xf32>
    %23 = vector.broadcast %9 : vector<1x1xf32> to vector<1x128xf32>
    %24 = arith.addf %22, %23 : vector<1x128xf32>
    %25 = vector.broadcast %5 : vector<64x1xf32> to vector<64x128xf32>
    %26 = arith.mulf %18, %25 : vector<64x128xf32>
    %cst_14 = arith.constant dense<0.000000e+00> : vector<128xf32>
    %27 = vector.multi_reduction <add>, %26, %cst_14 [0] : vector<64x128xf32> to vector<128xf32>
    %28 = vector.shape_cast %27 : vector<128xf32> to vector<1x128xf32>
    %29 = vector.broadcast %10 : vector<1x1xf32> to vector<1x128xf32>
    %30 = arith.addf %28, %29 : vector<1x128xf32>
    %cst_15 = arith.constant 5.000000e-01 : f32
    %31 = vector.broadcast %cst_15 : f32 to vector<1x128xf32>
    %32 = arith.mulf %31, %30 : vector<1x128xf32>
    %33 = math.exp %32 : vector<1x128xf32>
    %34 = arith.mulf %1, %33 : vector<1x128xf32>
    %35 = arith.addf %24, %34 : vector<1x128xf32>
    %36 = vector.broadcast %6 : vector<64x1xf32> to vector<64x128xf32>
    %37 = vector.broadcast %35 : vector<1x128xf32> to vector<64x128xf32>
    %38 = arith.mulf %36, %37 : vector<64x128xf32>
    %39 = vector.broadcast %7 : vector<64x1xf32> to vector<64x128xf32>
    %40 = arith.addf %38, %39 : vector<64x128xf32>
    %cst_16 = arith.constant 0.000000e+00 : f32
    %41 = vector.broadcast %cst_16 : f32 to vector<64x128xf32>
    %42 = arith.maximumf %40, %41 : vector<64x128xf32>
    %43 = vector.broadcast %8 : vector<64x1xf32> to vector<64x128xf32>
    %44 = arith.mulf %42, %43 : vector<64x128xf32>
    %cst_17 = arith.constant dense<0.000000e+00> : vector<128xf32>
    %45 = vector.multi_reduction <add>, %44, %cst_17 [0] : vector<64x128xf32> to vector<128xf32>
    %46 = vector.shape_cast %45 : vector<128xf32> to vector<1x128xf32>
    %47 = vector.broadcast %11 : vector<1x1xf32> to vector<1x128xf32>
    %48 = arith.addf %46, %47 : vector<1x128xf32>
    %c0_18 = arith.constant 0 : index
    %c0_19 = arith.constant 0 : index
    %49 = vector.load %arg3[%c0_18, %c0_19] : memref<3x128xf32, #tpu.memory_space<vmem>>, vector<1x128xf32>
    tpu.vector_store %arg3[%c0_18, %c0_19], %48 {strides = array<i32>} : memref<3x128xf32, #tpu.memory_space<vmem>>, vector<1x128xf32>,
    %c1_20 = arith.constant 1 : index
    %c0_21 = arith.constant 0 : index
    %50 = vector.load %arg3[%c1_20, %c0_21] : memref<3x128xf32, #tpu.memory_space<vmem>>, vector<1x128xf32>
    tpu.vector_store %arg3[%c1_20, %c0_21], %24 {strides = array<i32>} : memref<3x128xf32, #tpu.memory_space<vmem>>, vector<1x128xf32>,
    %c2 = arith.constant 2 : index
    %c0_22 = arith.constant 0 : index
    %51 = vector.load %arg3[%c2, %c0_22] : memref<3x128xf32, #tpu.memory_space<vmem>>, vector<1x128xf32>
    tpu.vector_store %arg3[%c2, %c0_22], %30 {strides = array<i32>} : memref<3x128xf32, #tpu.memory_space<vmem>>, vector<1x128xf32>,
    return
  }
  func.func @transform_0(%arg0: i32) -> (i32, i32) {
    %c0_i32 = arith.constant 0 : i32
    %c0_i32_0 = arith.constant 0 : i32
    return %c0_i32, %arg0 : i32, i32
  }
  func.func @transform_1(%arg0: i32) -> (i32, i32) {
    %c0_i32 = arith.constant 0 : i32
    %c0_i32_0 = arith.constant 0 : i32
    %c0_i32_1 = arith.constant 0 : i32
    return %c0_i32, %c0_i32_0 : i32, i32
  }
  func.func @transform_2(%arg0: i32) -> (i32, i32) {
    %c0_i32 = arith.constant 0 : i32
    %c0_i32_0 = arith.constant 0 : i32
    return %c0_i32, %arg0 : i32, i32
  }
}

</mosaic_0001>

<bundles_post_ra>
// kernel: vae_forward.1
= control target key start
LH: loop header
LB: loop body
LE: loop exit
PB: predicated region body
PF: predicated region fallthrough
CT: control target
= control target key end

     0   :  { %v502_v0 = vmov 0   ;;  %s719_s1 = inlined_call_operand.vmem [shape: f32[472,1], index: 1, kind: input, shape index: {}]   ;;  %s720_s0 = inlined_call_operand.vmem [shape: f32[2,128], index: 0, kind: input, shape index: {}]   ;;  %s721_s2 = inlined_call_operand.vmem [shape: f32[3,128], index: 2, kind: output, shape index: {}]  }
   0x1   :  { %498 = vset.pattern.permute.xlu2 %v502_v0  ;;  %497 = vset.pattern.permute.xlu1 %v502_v0  ;;  %v17_v1 = vld [vmem:[%s719_s1 + $0x20] sm:$0xff]  ;;  %v15_v2 = vld [vmem:[%s719_s1 + $0x10] sm:$0xff]  ;;  %v18_v4 = vld [vmem:[%s719_s1 + $0x28] sm:$0xff] }
   0x2   :  { %v13_v3 = vld [vmem:[%s719_s1] sm:$0xff]  ;;  %496 = vset.pattern.permute.xlu0 %v502_v0  ;;  %94 = vperm.xlu2 %498, %v17_v1   ;;  %v16_v5 = vld [vmem:[%s719_s1 + $0x18] sm:$0xff]  ;;  %v14_v6 = vld [vmem:[%s719_s1 + $0x8] sm:$0xff] }
   0x3   :  { %84 = vperm.xlu1 %497, %v15_v2   ;;  %74 = vperm.xlu0 %496, %v13_v3   ;;  %v21_v7 = vld [vmem:[%s719_s1 + $0x40] sm:$0xff]  ;;  %v20_v8 = vld [vmem:[%s719_s1 + $0x38] sm:$0xff]  ;;  %v19_v9 = vld [vmem:[%s719_s1 + $0x30] sm:$0xff] }
   0x4   :  { %v24_v10 = vld [vmem:[%s719_s1 + $0x58] sm:$0xff]  ;;  %v23_v11 = vld [vmem:[%s719_s1 + $0x50] sm:$0xff]  ;;  %v22_v12 = vld [vmem:[%s719_s1 + $0x48] sm:$0xff] }
   0x5   :  { %v27_v13 = vld [vmem:[%s719_s1 + $0x70] sm:$0xff]  ;;  %v26_v14 = vld [vmem:[%s719_s1 + $0x68] sm:$0xff]  ;;  %v25_v15 = vld [vmem:[%s719_s1 + $0x60] sm:$0xff] }
   0x6   :  { %v30_v16 = vld [vmem:[%s719_s1 + $0x88] sm:$0xff]  ;;  %v29_v17 = vld [vmem:[%s719_s1 + $0x80] sm:$0xff]  ;;  %v28_v18 = vld [vmem:[%s719_s1 + $0x78] sm:$0xff] }
   0x7   :  { %v33_v19 = vld [vmem:[%s719_s1 + $0xa0] sm:$0xff]  ;;  %v32_v20 = vld [vmem:[%s719_s1 + $0x98] sm:$0xff]  ;;  %v31_v21 = vld [vmem:[%s719_s1 + $0x90] sm:$0xff] }
   0x8   :  { %v36_v22 = vld [vmem:[%s719_s1 + $0xb8] sm:$0xff]  ;;  %v35_v23 = vld [vmem:[%s719_s1 + $0xb0] sm:$0xff]  ;;  %v34_v24 = vld [vmem:[%s719_s1 + $0xa8] sm:$0xff] }
   0x9   :  { %v38_v25 = vld [vmem:[%s719_s1 + $0xc8] sm:$0xff]  ;;  %v37_v26 = vld [vmem:[%s719_s1 + $0xc0] sm:$0xff]  ;;  %v40_v29 = vld [vmem:[%s719_s1 + $0xd8] sm:$0xff] }
   0xa   :  { %99 = vperm.xlu2 %498, %v18_v4   ;;  %v69_v27 = vld [vmem:[%s719_s1 + $0x1c0] sm:$0x1]  ;;  %v39_v30 = vld [vmem:[%s719_s1 + $0xd0] sm:$0xff]  ;;  %v44_v31 = vld [vmem:[%s719_s1 + $0xf8] sm:$0xff] }
   0xb   :  { %89 = vperm.xlu1 %497, %v16_v5   ;;  %79 = vperm.xlu0 %496, %v14_v6   ;;  %v41_v28 = vld [vmem:[%s719_s1 + $0xe0] sm:$0xff]  ;;  %v43_v32 = vld [vmem:[%s719_s1 + $0xf0] sm:$0xff]  ;;  %v42_v33 = vld [vmem:[%s719_s1 + $0xe8] sm:$0xff] }
   0xc   :  { %v46_v34 = vld [vmem:[%s719_s1 + $0x108] sm:$0xff]  ;;  %v45_v35 = vld [vmem:[%s719_s1 + $0x100] sm:$0xff]  ;;  %v48_v39 = vld [vmem:[%s719_s1 + $0x118] sm:$0xff] }
   0xd   :  { %v70_v36 = vld [vmem:[%s719_s1 + $0x1c8] sm:$0x1]  ;;  %v49_v38 = vld [vmem:[%s719_s1 + $0x120] sm:$0xff]  ;;  %v47_v40 = vld [vmem:[%s719_s1 + $0x110] sm:$0xff] }
   0xe   :  { %v52_v42 = vld [vmem:[%s719_s1 + $0x138] sm:$0xff]  ;;  %v51_v43 = vld [vmem:[%s719_s1 + $0x130] sm:$0xff]  ;;  %v50_v44 = vld [vmem:[%s719_s1 + $0x128] sm:$0xff] }
   0xf   :  { %v55_v46 = vld [vmem:[%s719_s1 + $0x150] sm:$0xff]  ;;  %v54_v47 = vld [vmem:[%s719_s1 + $0x148] sm:$0xff]  ;;  %v53_v48 = vld [vmem:[%s719_s1 + $0x140] sm:$0xff] }
  0x10   :  { %v58_v52 = vld [vmem:[%s719_s1 + $0x168] sm:$0xff]  ;;  %v57_v53 = vld [vmem:[%s719_s1 + $0x160] sm:$0xff]  ;;  %v56_v54 = vld [vmem:[%s719_s1 + $0x158] sm:$0xff] }
  0x11   :  { %v63_v58 = vld [vmem:[%s719_s1 + $0x190] sm:$0xff]  ;;  %v62_v59 = vld [vmem:[%s719_s1 + $0x188] sm:$0xff]  ;;  %v61_v60 = vld [vmem:[%s719_s1 + $0x180] sm:$0xff] }
  0x12   :  { %123 = vperm.xlu2 %498, %v21_v7   ;;  %v65_v63 = vld [vmem:[%s719_s1 + $0x1a0] sm:$0xff]  ;;  %v59_v1 = vld [vmem:[%s719_s1 + $0x170] sm:$0xff]  ;;  %v64_v2 = vld [vmem:[%s719_s1 + $0x198] sm:$0xff] }
  0x13   :  { %109 = vperm.xlu1 %497, %v20_v8   ;;  %104 = vperm.xlu0 %496, %v19_v9   ;;  %v67_v5 = vld [vmem:[%s719_s1 + $0x1b0] sm:$0xff]  ;;  %v66_v6 = vld [vmem:[%s719_s1 + $0x1a8] sm:$0xff]  ;;  %v60_v7 = vld [vmem:[%s719_s1 + $0x178] sm:$0xff] }
  0x14   :  { %v499_v9 = vld [vmem:[%s720_s0] ss:$0 sm:$0xff] }
  0x1a   :  { %138 = vperm.xlu2 %498, %v24_v10  }
  0x1b   :  { %133 = vperm.xlu1 %497, %v23_v11   ;;  %128 = vperm.xlu0 %496, %v22_v12  }
  0x22   :  { %153 = vperm.xlu2 %498, %v27_v13   ;;  %v71_v13 = vld [vmem:[%s719_s1 + $0x1d0] sm:$0x1] }
  0x23   :  { %148 = vperm.xlu1 %497, %v26_v14   ;;  %143 = vperm.xlu0 %496, %v25_v15   ;;  %v68_v14 = vld [vmem:[%s719_s1 + $0x1b8] sm:$0xff] }
  0x2a   :  { %184 = vperm.xlu2 %498, %v30_v16  }
  0x2b   :  { %179 = vperm.xlu1 %497, %v29_v17   ;;  %158 = vperm.xlu0 %496, %v28_v18  }
  0x32   :  { %199 = vperm.xlu2 %498, %v33_v19  }
  0x33   :  { %194 = vperm.xlu1 %497, %v32_v20   ;;  %189 = vperm.xlu0 %496, %v31_v21  }
  0x3a   :  { %214 = vperm.xlu2 %498, %v36_v22  }
  0x3b   :  { %209 = vperm.xlu1 %497, %v35_v23   ;;  %204 = vperm.xlu0 %496, %v34_v24  }
  0x42   :  { %251 = vperm.xlu2 %498, %v38_v25  }
  0x43   :  { %246 = vperm.xlu1 %497, %v37_v26   ;;  %240 = vperm.xlu0 %496, %v69_v27  }
  0x4a   :  { %266 = vperm.xlu2 %498, %v41_v28  }
  0x4b   :  { %261 = vperm.xlu1 %497, %v40_v29   ;;  %256 = vperm.xlu0 %496, %v39_v30  }
  0x52   :  { %281 = vperm.xlu2 %498, %v44_v31  }
  0x53   :  { %276 = vperm.xlu1 %497, %v43_v32   ;;  %271 = vperm.xlu0 %496, %v42_v33  }
  0x5a   :  { %323 = vperm.xlu2 %498, %v46_v34  }
  0x5b   :  { %318 = vperm.xlu1 %497, %v45_v35   ;;  %307 = vperm.xlu0 %496, %v70_v36  }
  0x5c   :  { %v626_v37 = vpop.permute.xlu2 %94 }
  0x5d   :  { %v117_v26 = vmul.f32 %v499_v9, %v626_v37 }
  0x62   :  { %338 = vperm.xlu2 %498, %v49_v38  }
  0x63   :  { %333 = vperm.xlu1 %497, %v48_v39   ;;  %328 = vperm.xlu0 %496, %v47_v40  }
  0x64   :  { %v637_v41 = vpop.permute.xlu2 %99 }
  0x65   :  { %v118_v32 = vmul.f32 %v499_v9, %v637_v41 }
  0x6a   :  { %353 = vperm.xlu2 %498, %v52_v42  }
  0x6b   :  { %348 = vperm.xlu1 %497, %v51_v43   ;;  %343 = vperm.xlu0 %496, %v50_v44  }
  0x6c   :  { %v124_v45 = vpop.permute.xlu2 %123 }
  0x72   :  { %377 = vperm.xlu2 %498, %v55_v46  }
  0x73   :  { %372 = vperm.xlu1 %497, %v54_v47   ;;  %367 = vperm.xlu0 %496, %v53_v48  }
  0x74   :  { %v139_v49 = vpop.permute.xlu2 %138 }
  0x75   :  { %v85_v50 = vpop.permute.xlu1 %84  ;;  %v75_v51 = vpop.permute.xlu0 %74 }
  0x76   :  { %v113_v12 = vmul.f32 %v499_v9, %v75_v51  ;;  %v115_v21 = vmul.f32 %v499_v9, %v85_v50 }
  0x78   :  { %v161_v16 = vadd.f32 %v124_v45, %v113_v12 }
  0x7a   :  { %392 = vperm.xlu2 %498, %v58_v52   ;;  %v169_v25 = vmax.f32 %v161_v16, 0.0 }
  0x7b   :  { %387 = vperm.xlu1 %497, %v57_v53   ;;  %382 = vperm.xlu0 %496, %v56_v54  }
  0x7c   :  { %v666_v57 = vpop.permute.xlu2 %153 }
  0x7d   :  { %v90_v55 = vpop.permute.xlu1 %89  ;;  %v80_v56 = vpop.permute.xlu0 %79 }
  0x7e   :  { %v114_v15 = vmul.f32 %v499_v9, %v80_v56  ;;  %v116_v22 = vmul.f32 %v499_v9, %v90_v55 }
  0x80   :  { %v164_v27 = vadd.f32 %v139_v49, %v116_v22 }
  0x82   :  { %433 = vperm.xlu2 %498, %v63_v58   ;;  %v172_v39 = vmax.f32 %v164_v27, 0.0 }
  0x83   :  { %428 = vperm.xlu1 %497, %v62_v59   ;;  %423 = vperm.xlu0 %496, %v61_v60  }
  0x84   :  { %v185_v0 = vpop.permute.xlu2 %184 }
  0x85   :  { %v110_v61 = vpop.permute.xlu1 %109  ;;  %v105_v62 = vpop.permute.xlu0 %104 }
  0x86   :  { %v119_v35 = vmul.f32 %v499_v9, %v105_v62  ;;  %v120_v42 = vmul.f32 %v499_v9, %v110_v61 }
  0x88   :  { %v167_v37 = vadd.f32 %v666_v57, %v119_v35 }
  0x8a   :  { %443 = vperm.xlu2 %498, %v65_v63   ;;  %v175_v53 = vmax.f32 %v167_v37, 0.0 }
  0x8b   :  { %397 = vperm.xlu1 %497, %v59_v1   ;;  %438 = vperm.xlu0 %496, %v64_v2  }
  0x8c   :  { %v200_v8 = vpop.permute.xlu2 %199 }
  0x8d   :  { %v134_v3 = vpop.permute.xlu1 %133  ;;  %v129_v4 = vpop.permute.xlu0 %128 }
  0x8e   :  { %v162_v17 = vadd.f32 %v129_v4, %v114_v15  ;;  %v163_v23 = vadd.f32 %v134_v3, %v115_v21 }
  0x90   :  { %v170_v24 = vmax.f32 %v162_v17, 0.0  ;;  %v171_v29 = vmax.f32 %v163_v23, 0.0 }
  0x92   :  { %453 = vperm.xlu2 %498, %v67_v5   ;;  %v218_v30 = vmul.f32 %v185_v0, %v170_v24 }
  0x93   :  { %448 = vperm.xlu1 %497, %v66_v6   ;;  %402 = vperm.xlu0 %496, %v60_v7  }
  0x94   :  { %v215_v18 = vpop.permute.xlu2 %214 }
  0x95   :  { %v149_v10 = vpop.permute.xlu1 %148  ;;  %v144_v11 = vpop.permute.xlu0 %143 }
  0x96   :  { %v165_v31 = vadd.f32 %v144_v11, %v117_v26  ;;  %v166_v43 = vadd.f32 %v149_v10, %v118_v32 }
  0x98   :  { %v173_v44 = vmax.f32 %v165_v31, 0.0  ;;  %v174_v49 = vmax.f32 %v166_v43, 0.0 }
  0x9a   :  { %v221_v50 = vmul.f32 %v200_v8, %v173_v44 }
  0x9b   :  { %484 = vperm.xlu1 %497, %v71_v13   ;;  %458 = vperm.xlu0 %496, %v68_v14  }
  0x9c   :  { %v252_v36 = vpop.permute.xlu2 %251 }
  0x9d   :  { %v180_v19 = vpop.permute.xlu1 %179  ;;  %v159_v20 = vpop.permute.xlu0 %158  ;;  %v285_v5 = vmul.f32 %v252_v36, %v170_v24 }
  0x9e   :  { %v217_v28 = vmul.f32 %v180_v19, %v169_v25  ;;  %v168_v47 = vadd.f32 %v159_v20, %v120_v42 }
  0xa0   :  { %v225_v38 = vadd.f32 %v218_v30, %v217_v28  ;;  %v176_v52 = vmax.f32 %v168_v47, 0.0  ;;  %v12_v47 = vld [vmem:[%s720_s0 + $0x1] sm:$0x1] }
  0xa2   :  { %v224_v60 = vmul.f32 %v215_v18, %v176_v52 }
  0xa4   :  { %v267_v56 = vpop.permute.xlu2 %266 }
  0xa5   :  { %v195_v33 = vpop.permute.xlu1 %194  ;;  %v190_v34 = vpop.permute.xlu0 %189  ;;  %v288_v17 = vmul.f32 %v267_v56, %v173_v44 }
  0xa6   :  { %v219_v40 = vmul.f32 %v190_v34, %v171_v29  ;;  %v220_v45 = vmul.f32 %v195_v33, %v172_v39 }
  0xa8   :  { %v226_v46 = vadd.f32 %v225_v38, %v219_v40 }
  0xaa   :  { %v227_v48 = vadd.f32 %v226_v46, %v220_v45 }
  0xac   :  { %v228_v55 = vadd.f32 %v227_v48, %v221_v50  ;;  %v282_v2 = vpop.permute.xlu2 %281 }
  0xad   :  { %v210_v51 = vpop.permute.xlu1 %209  ;;  %v205_v41 = vpop.permute.xlu0 %204 }
  0xae   :  { %v222_v54 = vmul.f32 %v205_v41, %v174_v49  ;;  %v223_v58 = vmul.f32 %v210_v51, %v175_v53 }
  0xb0   :  { %v229_v59 = vadd.f32 %v228_v55, %v222_v54 }
  0xb2   :  { %v230_v61 = vadd.f32 %v229_v59, %v223_v58 }
  0xb4   :  { %v231_v62 = vadd.f32 %v230_v61, %v224_v60  ;;  %v324_v18 = vpop.permute.xlu2 %323 }
  0xb5   :  { %v247_v63 = vpop.permute.xlu1 %246  ;;  %v241_v0 = vpop.permute.xlu0 %240 }
  0xb6   :  { %v232_v1 = vrot.slane %v231_v62, 4  ;;  %v284_v3 = vmul.f32 %v247_v63, %v169_v25  ;;  %v291_v25 = vmul.f32 %v282_v2, %v176_v52 }
  0xb8   :  { %v233_v57 = vadd.f32 %v232_v1, %v231_v62  ;;  %v292_v9 = vadd.f32 %v285_v5, %v284_v3 }
  0xba   :  { %v234_v4 = vrot.slane %v233_v57, 2 }
  0xbc   :  { %v235_v6 = vadd.f32 %v234_v4, %v233_v57  ;;  %v339_v30 = vpop.permute.xlu2 %338 }
  0xbd   :  { %v262_v7 = vpop.permute.xlu1 %261  ;;  %v257_v8 = vpop.permute.xlu0 %256 }
  0xbe   :  { %v236_v10 = vrot.slane %v235_v6, 1  ;;  %v286_v11 = vmul.f32 %v257_v8, %v171_v29  ;;  %v287_v13 = vmul.f32 %v262_v7, %v172_v39 }
  0xc0   :  { %v237_v12 = vadd.f32 %v236_v10, %v235_v6  ;;  %v293_v14 = vadd.f32 %v292_v9, %v286_v11 }
  0xc2   :  { %v243_v15 = vadd.f32 %v241_v0, %v237_v12  ;;  %v294_v16 = vadd.f32 %v293_v14, %v287_v13 }
  0xc4   :  { %489 = vst [vmem:[%s721_s2 + $0x1] sm:$0x1] %v243_v15  ;;  %v295_v22 = vadd.f32 %v294_v16, %v288_v17  ;;  %v354_v39 = vpop.permute.xlu2 %353 }
  0xc5   :  { %v277_v19 = vpop.permute.xlu1 %276  ;;  %v272_v20 = vpop.permute.xlu0 %271 }
  0xc6   :  { %v289_v21 = vmul.f32 %v272_v20, %v174_v49  ;;  %v290_v23 = vmul.f32 %v277_v19, %v175_v53 }
  0xc8   :  { %v296_v24 = vadd.f32 %v295_v22, %v289_v21 }
  0xca   :  { %v297_v26 = vadd.f32 %v296_v24, %v290_v23 }
  0xcc   :  { %v298_v27 = vadd.f32 %v297_v26, %v291_v25  ;;  %v378_v37 = vpop.permute.xlu2 %377 }
  0xcd   :  { %v319_v28 = vpop.permute.xlu1 %318  ;;  %v308_v29 = vpop.permute.xlu0 %307 }
  0xce   :  { %v299_v31 = vrot.slane %v298_v27, 4 }
  0xd0   :  { %v300_v32 = vadd.f32 %v299_v31, %v298_v27 }
  0xd2   :  { %v301_v33 = vrot.slane %v300_v32, 2 }
  0xd4   :  { %v302_v34 = vadd.f32 %v301_v33, %v300_v32  ;;  %v393_v53 = vpop.permute.xlu2 %392 }
  0xd5   :  { %v334_v35 = vpop.permute.xlu1 %333  ;;  %v329_v36 = vpop.permute.xlu0 %328 }
  0xd6   :  { %v303_v38 = vrot.slane %v302_v34, 1 }
  0xd8   :  { %v304_v40 = vadd.f32 %v303_v38, %v302_v34 }
  0xda   :  { %v310_v42 = vadd.f32 %v308_v29, %v304_v40 }
  0xdc   :  { %v311_v43 = vmul.f32 0.5, %v310_v42  ;;  %490 = vst [vmem:[%s721_s2 + $0x2] sm:$0x1] %v310_v42  ;;  %v434_v1 = vpop.permute.xlu2 %433 }
  0xdd   :  { %v349_v44 = vpop.permute.xlu1 %348  ;;  %v344_v45 = vpop.permute.xlu0 %343 }
  0xde   :  { %v312_v46 = vmul.f32 1.442695, %v311_v43 }
  0xe0   :  { %500 = vpow2.f32 %v312_v46 }
  0xe5   :  { %v373_v48 = vpop.permute.xlu1 %372  ;;  %v368_v49 = vpop.permute.xlu0 %367 }
  0xe6   :  { %v501_v50 = vpop.eup %500 }
  0xe7   :  { %v314_v51 = vmul.f32 %v501_v50, %v12_v47 }
  0xe9   :  { %v315_v41 = vadd.f32 %v314_v51, %v243_v15 }
  0xeb   :  { %v356_v52 = vperm.slane %v315_v41, 0 }
  0xed   :  { %v388_v54 = vpop.permute.xlu1 %387  ;;  %v383_v55 = vpop.permute.xlu0 %382  ;;  %v358_v56 = vmul.f32 %v356_v52, %v324_v18  ;;  %v357_v58 = vmul.f32 %v356_v52, %v319_v28  ;;  %v359_v59 = vmul.f32 %v356_v52, %v329_v36  ;;  %v360_v0 = vmul.f32 %v356_v52, %v334_v35 }
  0xee   :  { %v361_v4 = vmul.f32 %v356_v52, %v339_v30  ;;  %v362_v9 = vmul.f32 %v356_v52, %v344_v45  ;;  %v444_v18 = vpop.permute.xlu2 %443  ;;  %v363_v19 = vmul.f32 %v356_v52, %v349_v44  ;;  %v364_v29 = vmul.f32 %v356_v52, %v354_v39 }
  0xef   :  { %v406_v60 = vadd.f32 %v373_v48, %v358_v56  ;;  %v405_v61 = vadd.f32 %v368_v49, %v357_v58  ;;  %v407_v57 = vadd.f32 %v378_v37, %v359_v59  ;;  %v408_v5 = vadd.f32 %v383_v55, %v360_v0 }
  0xf0   :  { %v409_v12 = vadd.f32 %v388_v54, %v361_v4  ;;  %v410_v16 = vadd.f32 %v393_v53, %v362_v9 }
  0xf1   :  { %v414_v2 = vmax.f32 %v406_v60, 0.0  ;;  %v413_v3 = vmax.f32 %v405_v61, 0.0  ;;  %v415_v8 = vmax.f32 %v407_v57, 0.0  ;;  %v416_v13 = vmax.f32 %v408_v5, 0.0 }
  0xf2   :  { %v417_v20 = vmax.f32 %v409_v12, 0.0  ;;  %v418_v24 = vmax.f32 %v410_v16, 0.0 }
  0xf3   :  { %v463_v15 = vmul.f32 %v434_v1, %v415_v8 }
  0xf4   :  { %v465_v27 = vmul.f32 %v444_v18, %v417_v20 }
  0xf5   :  { %v429_v62 = vpop.permute.xlu1 %428  ;;  %v424_v63 = vpop.permute.xlu0 %423 }
  0xf6   :  { %v462_v6 = vmul.f32 %v429_v62, %v414_v2  ;;  %v461_v7 = vmul.f32 %v424_v63, %v413_v3  ;;  %v454_v34 = vpop.permute.xlu2 %453 }
  0xf8   :  { %v469_v14 = vadd.f32 %v462_v6, %v461_v7 }
  0xfa   :  { %v470_v21 = vadd.f32 %v469_v14, %v463_v15 }
  0xfd   :  { %v398_v10 = vpop.permute.xlu1 %397  ;;  %v439_v11 = vpop.permute.xlu0 %438 }
  0xfe   :  { %v464_v17 = vmul.f32 %v439_v11, %v416_v13  ;;  %v411_v22 = vadd.f32 %v398_v10, %v363_v19 }
 0x100   :  { %v471_v23 = vadd.f32 %v470_v21, %v464_v17  ;;  %v419_v30 = vmax.f32 %v411_v22, 0.0 }
 0x102   :  { %v472_v31 = vadd.f32 %v471_v23, %v465_v27  ;;  %v467_v35 = vmul.f32 %v454_v34, %v419_v30 }
 0x105   :  { %v449_v25 = vpop.permute.xlu1 %448  ;;  %v403_v26 = vpop.permute.xlu0 %402 }
 0x106   :  { %v466_v28 = vmul.f32 %v449_v25, %v418_v24  ;;  %v412_v32 = vadd.f32 %v403_v26, %v364_v29 }
 0x108   :  { %v473_v33 = vadd.f32 %v472_v31, %v466_v28  ;;  %v420_v36 = vmax.f32 %v412_v32, 0.0 }
 0x10a   :  { %v474_v42 = vadd.f32 %v473_v33, %v467_v35 }
 0x10d   :  { %v459_v38 = vpop.permute.xlu0 %458  ;;  %v485_v49 = vpop.permute.xlu1 %484 }
 0x10e   :  { %v468_v40 = vmul.f32 %v459_v38, %v420_v36 }
 0x110   :  { %v475_v43 = vadd.f32 %v474_v42, %v468_v40 }
 0x112   :  { %v476_v44 = vrot.slane %v475_v43, 4 }
 0x114   :  { %v477_v45 = vadd.f32 %v476_v44, %v475_v43 }
 0x116   :  { %v478_v46 = vrot.slane %v477_v45, 2 }
 0x118   :  { %v479_v37 = vadd.f32 %v478_v46, %v477_v45 }
 0x11a   :  { %v480_v47 = vrot.slane %v479_v37, 1 }
 0x11c   :  { %v481_v48 = vadd.f32 %v480_v47, %v479_v37 }
 0x11e   :  { %v487_v50 = vadd.f32 %v485_v49, %v481_v48 }
 0x120   :  { %488 = vst [vmem:[%s721_s2] sm:$0x1] %v487_v50 }

</bundles_post_ra>
